<compile_context>
chip_gen: v6e
topology: v6e:2x2x1
jax: 0.10.0
libtpu: 0.0.40
codegen_flags: <defaults>
</compile_context>

<pallas_src>
import functools

import jax
import jax.numpy as jnp
from jax.experimental import pallas as pl
from jax.experimental.pallas import tpu as pltpu


def _convnet_kernel(x_ref, w1_ref, w2_ref, out_ref, *, K, L, Lh, Lout, Lx):
    """Fused causal-conv x2 on the tail window, single grid step.

    x_ref  : (B, Cin, L)            full input, channels-first (PyTorch NCL), f32
    w1_ref : (Ch,  K*Cin + 1)       conv1 taps (tap-major) with bias column, f32
    w2_ref : (Cout, K*Ch + 1)       conv2 taps (tap-major) with bias column, f32
    out_ref: (B, Cout, Lout)        f32
    """
    B, Cin, _ = x_ref.shape
    Cout = out_ref.shape[1]

    x = x_ref[...]                                        # (B, Cin, L)

    # Tail window of the input; causal zeros only if the window reaches t < 0.
    if Lx <= L:
        xt = x[:, :, L - Lx:]                             # (B, Cin, Lx)
    else:
        pad = jnp.zeros((B, Cin, Lx - L), x.dtype)
        xt = jnp.concatenate([pad, x], axis=-1)           # (B, Cin, Lx)

    # --- conv1 as a single MXU matmul: taps -> contraction rows, batch -> lanes
    ones_h = jnp.ones((1, Lh), jnp.float32)
    cols1 = []
    for b in range(B):                                    # B is small & static
        taps = [xt[b, :, k:k + Lh] for k in range(K)]     # each (Cin, Lh)
        cols1.append(jnp.concatenate(taps + [ones_h], axis=0))   # (K*Cin+1, Lh)
    rhs1 = jnp.concatenate(cols1, axis=1)                 # (K*Cin+1, B*Lh)
    hid = jnp.dot(w1_ref[...], rhs1,
                  preferred_element_type=jnp.float32)     # (Ch, B*Lh)

    # --- conv2, same im2col trick on the hidden activations -----------------
    ones_o = jnp.ones((1, Lout), jnp.float32)
    cols2 = []
    for b in range(B):
        hb = hid[:, b * Lh:(b + 1) * Lh]                  # (Ch, Lh)
        taps = [hb[:, k:k + Lout] for k in range(K)]      # each (Ch, Lout)
        cols2.append(jnp.concatenate(taps + [ones_o], axis=0))   # (K*Ch+1, Lout)
    rhs2 = jnp.concatenate(cols2, axis=1)                 # (K*Ch+1, B*Lout)
    out = jnp.dot(w2_ref[...], rhs2,
                  preferred_element_type=jnp.float32)     # (Cout, B*Lout)

    for b in range(B):
        out_ref[b] = out[:, b * Lout:(b + 1) * Lout].astype(out_ref.dtype)


def prepare_convnet_params(w1, b1, w2, b2):
    """One-time parameter packing (hoisted out of the per-call path).

    w1: (Ch, Cin, K), b1: (Ch,), w2: (Cout, Ch, K), b2: (Cout,)  (PyTorch Conv1d)
    Returns W1aug (Ch, K*Cin+1), W2aug (Cout, K*Ch+1): tap-major columns + bias.
    """
    Ch, Cin, K = w1.shape
    Cout = w2.shape[0]
    w1_aug = jnp.concatenate(
        [jnp.transpose(w1, (0, 2, 1)).reshape(Ch, K * Cin),
         b1.reshape(Ch, 1)], axis=1).astype(jnp.float32)
    w2_aug = jnp.concatenate(
        [jnp.transpose(w2, (0, 2, 1)).reshape(Cout, K * Ch),
         b2.reshape(Cout, 1)], axis=1).astype(jnp.float32)
    return w1_aug, w2_aug


def convnet_forward(x_ncl, w1_aug, w2_aug, len_seq_out, kernel_size):
    """x_ncl: (B, Cin, L) f32 (PyTorch NCL). Returns (B, Cout, len_seq_out) f32."""
    B, Cin, L = x_ncl.shape
    K = kernel_size
    Ch = w1_aug.shape[0]
    Cout = w2_aug.shape[0]
    Lout = len_seq_out
    Lh = Lout + (K - 1)          # hidden timesteps conv2 needs
    Lx = Lout + 2 * (K - 1)      # input timesteps conv1 needs (incl. causal zeros)

    if Lh > L:
        # Tail-window shortcut assumes all needed hidden steps have t >= 0.
        raise ValueError("len_seq_out + kernel_size - 1 must be <= sequence length")

    flops = 2 * B * (Lh * (K * Cin + 1) * Ch + Lout * (K * Ch + 1) * Cout)
    bytes_accessed = 4 * (B * Cin * L + Ch * (K * Cin + 1)
                          + Cout * (K * Ch + 1) + B * Cout * Lout)

    kernel = functools.partial(_convnet_kernel, K=K, L=L, Lh=Lh, Lout=Lout, Lx=Lx)

    return pl.pallas_call(
        kernel,
        out_shape=jax.ShapeDtypeStruct((B, Cout, Lout), jnp.float32),
        grid=(1,),
        in_specs=[
            pl.BlockSpec((B, Cin, L), lambda i: (0, 0, 0)),
            pl.BlockSpec((Ch, K * Cin + 1), lambda i: (0, 0)),
            pl.BlockSpec((Cout, K * Ch + 1), lambda i: (0, 0)),
        ],
        out_specs=pl.BlockSpec((B, Cout, Lout), lambda i: (0, 0, 0)),
        compiler_params=pltpu.CompilerParams(
            dimension_semantics=("arbitrary",)),
        cost_estimate=pl.CostEstimate(flops=flops, transcendentals=0,
                                      bytes_accessed=bytes_accessed),
    )(x_ncl, w1_aug, w2_aug)


def _ref_forward(x_ncl, w1, b1, w2, b2, len_seq_out):
    """Pure-JAX f32 reference matching PyTorch CausalConv1d (cross-correlation),
    full-length then tail-sliced."""
    def causal_conv(x, w, b):
        B, Cin, L = x.shape
        Cout, _, K = w.shape
        xp = jnp.pad(x, ((0, 0), (0, 0), (K - 1, 0)))
        y = jnp.zeros((B, Cout, L), jnp.float32)
        for k in range(K):
            y = y + jnp.einsum('oc,bcl->bol', w[:, :, k], xp[:, :, k:k + L])
        return y + b[None, :, None]

    h = causal_conv(x_ncl, w1, b1)
    y = causal_conv(h, w2, b2)
    return y[:, :, -len_seq_out:]


if __name__ == "__main__":
    # config consistent with the module: two causal convs + tail slice
    config = dict(in_channels=4, hidden_channels=32, out_channels=4,
                  kernel_size=3, step_prediction=2, step_share=2)
    len_seq_out = config['step_prediction'] + config['step_share']   # = 4

    B, L = 2, 16
    Cin, Ch, Cout, K = (config['in_channels'], config['hidden_channels'],
                        config['out_channels'], config['kernel_size'])

    key = jax.random.PRNGKey(0)
    kx, k1, k2, k3, k4 = jax.random.split(key, 5)
    x = jax.random.normal(kx, (B, Cin, L), jnp.float32)
    # deterministic synthetic parameters (same shapes as nn.Conv1d weights/biases)
    w1 = jax.random.normal(k1, (Ch, Cin, K), jnp.float32) * 0.1
    b1 = jax.random.normal(k2, (Ch,), jnp.float32) * 0.1
    w2 = jax.random.normal(k3, (Cout, Ch, K), jnp.float32) * 0.1
    b2 = jax.random.normal(k4, (Cout,), jnp.float32) * 0.1

    # one-time parameter prep (out of the per-call path)
    w1_aug, w2_aug = prepare_convnet_params(w1, b1, w2, b2)

    out = convnet_forward(x, w1_aug, w2_aug, len_seq_out, K)
    jax.block_until_ready(out)

    ref = _ref_forward(x, w1, b1, w2, b2, len_seq_out)
    assert out.shape == (B, Cout, len_seq_out), out.shape
    # f32 end-to-end: only MXU-vs-XLA accumulation-order noise remains; a real
    # indexing/padding bug would be orders of magnitude larger.
    assert jnp.allclose(out, ref, atol=1e-3, rtol=1e-3), "mismatch vs reference"

    print("KERNEL_OK")
</pallas_src>

<mosaic_0001>
module attributes {stable_mosaic.version = 11 : i64} {
  func.func @_convnet_kernel(%arg0: i32, %arg1: memref<2x4x16xf32, #tpu.memory_space<vmem>>, %arg2: memref<32x13xf32, #tpu.memory_space<vmem>>, %arg3: memref<4x97xf32, #tpu.memory_space<vmem>>, %arg4: memref<2x4x4xf32, #tpu.memory_space<vmem>>) attributes {dimension_semantics = [#tpu.dimension_semantics<arbitrary>], iteration_bounds = array<i64: 1>, scalar_prefetch = 0 : i64, scratch_operands = 0 : i64, tpu.core_type = #tpu.core_type<tc>, window_params = [{pipeline_mode = #tpu.pipeline_mode<synchronous>, transform_indices = @transform_0, window_bounds = array<i64: 2, 4, 16>}, {pipeline_mode = #tpu.pipeline_mode<synchronous>, transform_indices = @transform_1, window_bounds = array<i64: 32, 13>}, {pipeline_mode = #tpu.pipeline_mode<synchronous>, transform_indices = @transform_2, window_bounds = array<i64: 4, 97>}, {pipeline_mode = #tpu.pipeline_mode<synchronous>, transform_indices = @transform_3, window_bounds = array<i64: 2, 4, 4>}]} {
    %c0 = arith.constant 0 : index
    %c0_0 = arith.constant 0 : index
    %c0_1 = arith.constant 0 : index
    %0 = vector.load %arg1[%c0, %c0_0, %c0_1] : memref<2x4x16xf32, #tpu.memory_space<vmem>>, vector<2x4x16xf32>
    %1 = vector.extract_strided_slice %0 {offsets = [0, 0, 8], sizes = [2, 4, 8], strides = [1, 1, 1]} : vector<2x4x16xf32> to vector<2x4x8xf32>
    %cst = arith.constant 1.000000e+00 : f32
    %2 = vector.broadcast %cst : f32 to vector<1x6xf32>
    %3 = vector.extract_strided_slice %1 {offsets = [0, 0, 0], sizes = [1, 4, 6], strides = [1, 1, 1]} : vector<2x4x8xf32> to vector<1x4x6xf32>
    %4 = vector.shape_cast %3 : vector<1x4x6xf32> to vector<4x6xf32>
    %5 = vector.extract_strided_slice %1 {offsets = [0, 0, 1], sizes = [1, 4, 6], strides = [1, 1, 1]} : vector<2x4x8xf32> to vector<1x4x6xf32>
    %6 = vector.shape_cast %5 : vector<1x4x6xf32> to vector<4x6xf32>
    %7 = vector.extract_strided_slice %1 {offsets = [0, 0, 2], sizes = [1, 4, 6], strides = [1, 1, 1]} : vector<2x4x8xf32> to vector<1x4x6xf32>
    %8 = vector.shape_cast %7 : vector<1x4x6xf32> to vector<4x6xf32>
    %9 = tpu.concatenate %4, %6, %8, %2 in 0 : vector<4x6xf32>, vector<4x6xf32>, vector<4x6xf32>, vector<1x6xf32> -> vector<13x6xf32>
    %10 = vector.extract_strided_slice %1 {offsets = [1, 0, 0], sizes = [1, 4, 6], strides = [1, 1, 1]} : vector<2x4x8xf32> to vector<1x4x6xf32>
    %11 = vector.shape_cast %10 : vector<1x4x6xf32> to vector<4x6xf32>
    %12 = vector.extract_strided_slice %1 {offsets = [1, 0, 1], sizes = [1, 4, 6], strides = [1, 1, 1]} : vector<2x4x8xf32> to vector<1x4x6xf32>
    %13 = vector.shape_cast %12 : vector<1x4x6xf32> to vector<4x6xf32>
    %14 = vector.extract_strided_slice %1 {offsets = [1, 0, 2], sizes = [1, 4, 6], strides = [1, 1, 1]} : vector<2x4x8xf32> to vector<1x4x6xf32>
    %15 = vector.shape_cast %14 : vector<1x4x6xf32> to vector<4x6xf32>
    %16 = tpu.concatenate %11, %13, %15, %2 in 0 : vector<4x6xf32>, vector<4x6xf32>, vector<4x6xf32>, vector<1x6xf32> -> vector<13x6xf32>
    %17 = tpu.concatenate %9, %16 in 1 : vector<13x6xf32>, vector<13x6xf32> -> vector<13x12xf32>
    %c0_2 = arith.constant 0 : index
    %c0_3 = arith.constant 0 : index
    %18 = vector.load %arg2[%c0_2, %c0_3] : memref<32x13xf32, #tpu.memory_space<vmem>>, vector<32x13xf32>
    %cst_4 = arith.constant dense<0.000000e+00> : vector<32x12xf32>
    %19 = tpu.matmul %18, %17, %cst_4 {dimension_numbers = #tpu.dot_dimension_numbers<[1], [0], [0], [1], [0, 0, 1, 1], [], []>} : vector<32x13xf32>, vector<13x12xf32>, vector<32x12xf32> -> vector<32x12xf32>
    %cst_5 = arith.constant 1.000000e+00 : f32
    %20 = vector.broadcast %cst_5 : f32 to vector<1x4xf32>
    %21 = vector.extract_strided_slice %19 {offsets = [0, 0], sizes = [32, 6], strides = [1, 1]} : vector<32x12xf32> to vector<32x6xf32>
    %22 = vector.extract_strided_slice %21 {offsets = [0, 0], sizes = [32, 4], strides = [1, 1]} : vector<32x6xf32> to vector<32x4xf32>
    %23 = vector.extract_strided_slice %21 {offsets = [0, 1], sizes = [32, 4], strides = [1, 1]} : vector<32x6xf32> to vector<32x4xf32>
    %24 = vector.extract_strided_slice %21 {offsets = [0, 2], sizes = [32, 4], strides = [1, 1]} : vector<32x6xf32> to vector<32x4xf32>
    %25 = tpu.concatenate %22, %23, %24, %20 in 0 : vector<32x4xf32>, vector<32x4xf32>, vector<32x4xf32>, vector<1x4xf32> -> vector<97x4xf32>
    %26 = vector.extract_strided_slice %19 {offsets = [0, 6], sizes = [32, 6], strides = [1, 1]} : vector<32x12xf32> to vector<32x6xf32>
    %27 = vector.extract_strided_slice %26 {offsets = [0, 0], sizes = [32, 4], strides = [1, 1]} : vector<32x6xf32> to vector<32x4xf32>
    %28 = vector.extract_strided_slice %26 {offsets = [0, 1], sizes = [32, 4], strides = [1, 1]} : vector<32x6xf32> to vector<32x4xf32>
    %29 = vector.extract_strided_slice %26 {offsets = [0, 2], sizes = [32, 4], strides = [1, 1]} : vector<32x6xf32> to vector<32x4xf32>
    %30 = tpu.concatenate %27, %28, %29, %20 in 0 : vector<32x4xf32>, vector<32x4xf32>, vector<32x4xf32>, vector<1x4xf32> -> vector<97x4xf32>
    %31 = tpu.concatenate %25, %30 in 1 : vector<97x4xf32>, vector<97x4xf32> -> vector<97x8xf32>
    %c0_6 = arith.constant 0 : index
    %c0_7 = arith.constant 0 : index
    %32 = vector.load %arg3[%c0_6, %c0_7] : memref<4x97xf32, #tpu.memory_space<vmem>>, vector<4x97xf32>
    %cst_8 = arith.constant dense<0.000000e+00> : vector<4x8xf32>
    %33 = tpu.matmul %32, %31, %cst_8 {dimension_numbers = #tpu.dot_dimension_numbers<[1], [0], [0], [1], [0, 0, 1, 1], [], []>} : vector<4x97xf32>, vector<97x8xf32>, vector<4x8xf32> -> vector<4x8xf32>
    %34 = vector.extract_strided_slice %33 {offsets = [0, 0], sizes = [4, 4], strides = [1, 1]} : vector<4x8xf32> to vector<4x4xf32>
    %c0_9 = arith.constant 0 : index
    %c0_10 = arith.constant 0 : index
    %c0_11 = arith.constant 0 : index
    %35 = vector.load %arg4[%c0_9, %c0_10, %c0_11] : memref<2x4x4xf32, #tpu.memory_space<vmem>>, vector<1x4x4xf32>
    %36 = vector.shape_cast %35 : vector<1x4x4xf32> to vector<4x4xf32>
    %37 = vector.shape_cast %34 : vector<4x4xf32> to vector<1x4x4xf32>
    tpu.vector_store %arg4[%c0_9, %c0_10, %c0_11], %37 {strides = array<i32>} : memref<2x4x4xf32, #tpu.memory_space<vmem>>, vector<1x4x4xf32>,
    %38 = vector.extract_strided_slice %33 {offsets = [0, 4], sizes = [4, 4], strides = [1, 1]} : vector<4x8xf32> to vector<4x4xf32>
    %c1 = arith.constant 1 : index
    %c0_12 = arith.constant 0 : index
    %c0_13 = arith.constant 0 : index
    %39 = vector.load %arg4[%c1, %c0_12, %c0_13] : memref<2x4x4xf32, #tpu.memory_space<vmem>>, vector<1x4x4xf32>
    %40 = vector.shape_cast %39 : vector<1x4x4xf32> to vector<4x4xf32>
    %41 = vector.shape_cast %38 : vector<4x4xf32> to vector<1x4x4xf32>
    tpu.vector_store %arg4[%c1, %c0_12, %c0_13], %41 {strides = array<i32>} : memref<2x4x4xf32, #tpu.memory_space<vmem>>, vector<1x4x4xf32>,
    return
  }
  func.func @transform_0(%arg0: i32) -> (i32, i32, i32) {
    %c0_i32 = arith.constant 0 : i32
    %c0_i32_0 = arith.constant 0 : i32
    %c0_i32_1 = arith.constant 0 : i32
    %c0_i32_2 = arith.constant 0 : i32
    return %c0_i32, %c0_i32_0, %c0_i32_1 : i32, i32, i32
  }
  func.func @transform_1(%arg0: i32) -> (i32, i32) {
    %c0_i32 = arith.constant 0 : i32
    %c0_i32_0 = arith.constant 0 : i32
    %c0_i32_1 = arith.constant 0 : i32
    return %c0_i32, %c0_i32_0 : i32, i32
  }
  func.func @transform_2(%arg0: i32) -> (i32, i32) {
    %c0_i32 = arith.constant 0 : i32
    %c0_i32_0 = arith.constant 0 : i32
    %c0_i32_1 = arith.constant 0 : i32
    return %c0_i32, %c0_i32_0 : i32, i32
  }
  func.func @transform_3(%arg0: i32) -> (i32, i32, i32) {
    %c0_i32 = arith.constant 0 : i32
    %c0_i32_0 = arith.constant 0 : i32
    %c0_i32_1 = arith.constant 0 : i32
    %c0_i32_2 = arith.constant 0 : i32
    return %c0_i32, %c0_i32_0, %c0_i32_1 : i32, i32, i32
  }
}

</mosaic_0001>

<bundles_post_ra>
// kernel: tpu_custom_call.1
= control target key start
LH: loop header
LB: loop body
LE: loop exit
PB: predicated region body
PF: predicated region fallthrough
CT: control target
= control target key end

     0   :  { %s434_s14 = smov 126   ;;  %s562_s0 = inlined_call_operand.vmem [shape: f32[2,4,16], index: 0, kind: input, shape index: {}]   ;;  %s563_s1 = inlined_call_operand.vmem [shape: f32[32,13], index: 1, kind: input, shape index: {}]   ;;  %s564_s2 = inlined_call_operand.vmem [shape: f32[4,97], index: 2, kind: input, shape index: {}]   ;;  %s565_s3 = inlined_call_operand.hbm [shape: f32[2,4,4], index: 3, kind: output, shape index: {}]  }
   0x1   :  { %v15_v0 = vld [vmem:[%s562_s0] sm:$0xf] }
   0x2   :  { %22 = vrot.lane.b32.xlu0 %v15_v0, %s434_s14  ;;  %v18_v1 = vrot.slane %v15_v0, 4 }
   0x3   :  { %8 = vsyncpa [#allocation3], 0  ;;  %v16_v2 = vld [vmem:[%s562_s0 + $0x4] sm:$0xf]  ;;  %s435_s17 = smov 127   ;;  %vm25_vm0 = vcmask 1043456  }
   0x4   :  { %19 = vrot.lane.b32.xlu1 %v18_v1, %s435_s17  ;;  %v29_v3 = vrot.slane %v16_v2, 4  ;;  %v57_v4 = vld [vmem:[%s563_s1] sm:$0xff]  ;;  %vm61_vm1 = vcmask 105472   ;;  %s436_s20 = smov 120   ;;  %vm54_vm2 = vcmask 48128   ;;  %vm74_vm3 = vcmask 1044480  }
   0x5   :  { %367 = vmatprep.mubr.msk.f32.mxu0 %vm61_vm1, %v57_v4  ;;  %v58_v19 = vld [vmem:[%s563_s1 + $0x8] sm:$0xff]  ;;  %v59_v20 = vld [vmem:[%s563_s1 + $0x10] sm:$0xff]  ;;  %v60_v21 = vld [vmem:[%s563_s1 + $0x18] sm:$0xff]  ;;  %v437_v26 = vmov 0.0   ;;  %v438_v27 = vmov 1.0   ;;  %vm439_vm4 = vmmov 0  }
   0x6   :  { %33 = vrot.lane.b32.xlu0 %v16_v2, %s434_s14  ;;  %373 = vmatprep.subr.mxu1 %v437_v26  ;;  %vm238_vm5 = vcmask 1040384   ;;  %vm219_vm6 = vcmask 31744   ;;  %v233_v57 = vld [vmem:[%s564_s2] sm:$0xf]  ;;  %vm234_vm7 = vcmask 793600   ;;  %vm312_vm8 = vcmask 27648  }
   0x7   :  { %399 = vmatprep.mubr.msk.f32.mxu1 %vm439_vm4, %v437_v26  ;;  %s440_s27 = smov 124   ;;  %s441_s28 = smov [#allocation2]  }
   0x8   :  { %30 = vrot.lane.b32.xlu1 %v29_v3, %s435_s17  ;;  %s325_s29 = sshll.u32 %s441_s28, 4  ;;  %s326_s29 = int_to_ptr.vmem [resolvable:$true] %s325_s29 }
   0x9   :  { %s412_s2 = scalar_lea.vmem %s326_s29, 128  ;;  %p417_p1 = scmp.lt.s32.totalorder %s326_s29, %s326_s29 }
   0xa   :  { %p413_p0 = scmp.ne.s32.totalorder %s326_s29, %s412_s2  ;;  %p418_p2 = scmp.lt.s32.totalorder %s412_s2, %s412_s2 }
   0xc   :  { %p419_p3 = por %p418_p2, %p417_p1 }
   0xe   :  { %p420_p4 = pnand %p419_p3, %p413_p0 }
  0x74   :  { %v23_v5 = vpop.permute.xlu0 %22 }
  0x75   :  { %v27_v6 = vsel %vm25_vm0, %v23_v5, 1.0 }
  0x76   :  { %42 = vrot.lane.b32.xlu0 %v27_v6, %s436_s20  ;;  %v20_v7 = vpop.permute.xlu1 %19 }
  0x77   :  { %v26_v8 = vsel %vm25_vm0, %v15_v0, %v20_v7 }
  0x78   :  { %v34_v9 = vpop.permute.xlu0 %33 }
  0x79   :  { %v37_v10 = vsel %vm25_vm0, %v34_v9, 1.0 }
  0x7a   :  { %50 = vrot.lane.b32.xlu1 %v37_v10, %s434_s14  ;;  %40 = vrot.lane.b32.xlu0 %v26_v8, %s436_s20  ;;  %v31_v11 = vpop.permute.xlu1 %30 }
  0x7b   :  { %v36_v12 = vsel %vm25_vm0, %v16_v2, %v31_v11 }
  0x7e   :  { %48 = vrot.lane.b32.xlu1 %v36_v12, %s434_s14 }
  0xe8   :  { %v43_v13 = vpop.permute.xlu0 %42 }
  0xec   :  { %v51_v14 = vpop.permute.xlu1 %50  ;;  %v41_v16 = vpop.permute.xlu0 %40 }
  0xed   :  { %v56_v15 = vsel %vm54_vm2, %v43_v13, %v51_v14 }
  0xee   :  { %363 = vmatprep.subr.msk.mxu0 %vm74_vm3, %v56_v15 }
  0xef   :  { %364 = vmatpush3.msk.msra.mxu0 %vm74_vm3, %v56_v15 }
  0xf0   :  { %v49_v17 = vpop.permute.xlu1 %48 }
  0xf1   :  { %v55_v18 = vsel %vm54_vm2, %v41_v16, %v49_v17 }
  0xf2   :  { %365 = vmatprep.subr.mxu0 %v55_v18 }
  0xf3   :  { %366 = vmatpush3.msra.mxu0 %v55_v18 }
  0xf4   :  { %368 = vmatmul.mubr.msk.f32.vlgmr.msra.gmra.mxu0 %vm61_vm1, %v58_v19 }
  0xf5   :  { %370 = vmatprep.mubr.msk.f32.mxu0 %vm61_vm1, %v59_v20 }
  0xf8   :  { %371 = vmatmul.mubr.msk.f32.gmra.mxu0 %vm61_vm1, %v60_v21 }
 0x1b4   :  { %v492_v22 = vpop.f32.mrf.mxu0 }
 0x1b6   :  { %v494_v23 = vpop.f32.mrf.mxu0 }
 0x1b8   :  { %v496_v24 = vpop.f32.mrf.mxu0 }
 0x1b9   :  { %185 = vrot.lane.b32.xlu0 %v496_v24, %s434_s14 }
 0x1ba   :  { %v500_v25 = vpop.f32.mrf.mxu0 }
 0x1bb   :  { %183 = vrot.lane.b32.xlu1 %v500_v25, %s434_s14 }
 0x1bd   :  { %181 = vrot.lane.b32.xlu0 %v492_v22, %s434_s14 }
 0x1bf   :  { %179 = vrot.lane.b32.xlu1 %v494_v23, %s434_s14 }
 0x1c1   :  { %173 = vrot.lane.b32.xlu0 %v496_v24, %s435_s17 }
 0x1c3   :  { %171 = vrot.lane.b32.xlu1 %v500_v25, %s435_s17 }
 0x1c5   :  { %169 = vrot.lane.b32.xlu0 %v492_v22, %s435_s17 }
 0x1c7   :  { %167 = vrot.lane.b32.xlu1 %v494_v23, %s435_s17 }
 0x1c9   :  { %208 = vrot.lane.b32.xlu0 %v438_v27, %s434_s14 }
 0x22b   :  { %v186_v28 = vpop.permute.xlu0 %185 }
 0x22c   :  { %206 = vrot.lane.b32.xlu1 %v186_v28, %s434_s14  ;;  %v223_v54 = vsel %vm219_vm6, %v496_v24, %v186_v28 }
 0x22d   :  { %v184_v29 = vpop.permute.xlu1 %183 }
 0x22e   :  { %204 = vrot.lane.b32.xlu0 %v184_v29, %s434_s14  ;;  %v222_v55 = vsel %vm219_vm6, %v500_v25, %v184_v29 }
 0x22f   :  { %v182_v30 = vpop.permute.xlu0 %181 }
 0x230   :  { %202 = vrot.lane.b32.xlu1 %v182_v30, %s434_s14  ;;  %v221_v56 = vsel %vm219_vm6, %v492_v22, %v182_v30 }
 0x231   :  { %v180_v31 = vpop.permute.xlu1 %179 }
 0x232   :  { %200 = vrot.lane.b32.xlu0 %v180_v31, %s434_s14  ;;  %v220_v58 = vsel %vm219_vm6, %v494_v23, %v180_v31 }
 0x233   :  { %v174_v32 = vpop.permute.xlu0 %173 }
 0x234   :  { %198 = vrot.lane.b32.xlu1 %v174_v32, %s434_s14 }
 0x235   :  { %v172_v33 = vpop.permute.xlu1 %171 }
 0x236   :  { %196 = vrot.lane.b32.xlu0 %v172_v33, %s434_s14 }
 0x237   :  { %v170_v34 = vpop.permute.xlu0 %169 }
 0x238   :  { %194 = vrot.lane.b32.xlu1 %v170_v34, %s434_s14 }
 0x239   :  { %v168_v35 = vpop.permute.xlu1 %167 }
 0x23a   :  { %192 = vrot.lane.b32.xlu0 %v168_v35, %s434_s14 }
 0x23b   :  { %v209_v36 = vpop.permute.xlu0 %208 }
 0x23c   :  { %v232_v37 = vsel %vm219_vm6, 1.0, %v209_v36 }
 0x23d   :  { %374 = vmatpush3.msk.msra.mxu1 %vm238_vm5, %v232_v37 }
 0x23e   :  { %375 = vmatprep.subr.mxu1 %v437_v26 }
 0x29e   :  { %v207_v38 = vpop.permute.xlu1 %206 }
 0x29f   :  { %v231_v39 = vsel %vm219_vm6, %v186_v28, %v207_v38 }
 0x2a0   :  { %v205_v40 = vpop.permute.xlu0 %204  ;;  %376 = vmatpush3.msra.mxu1 %v231_v39 }
 0x2a1   :  { %377 = vmatprep.subr.mxu1 %v437_v26  ;;  %v230_v41 = vsel %vm219_vm6, %v184_v29, %v205_v40 }
 0x2a2   :  { %378 = vmatpush3.msra.mxu1 %v230_v41  ;;  %v203_v42 = vpop.permute.xlu1 %202 }
 0x2a3   :  { %379 = vmatprep.subr.mxu1 %v437_v26  ;;  %v229_v43 = vsel %vm219_vm6, %v182_v30, %v203_v42 }
 0x2a4   :  { %v201_v44 = vpop.permute.xlu0 %200  ;;  %380 = vmatpush3.msra.mxu1 %v229_v43 }
 0x2a5   :  { %381 = vmatprep.subr.mxu1 %v437_v26  ;;  %v228_v45 = vsel %vm219_vm6, %v180_v31, %v201_v44 }
 0x2a6   :  { %382 = vmatpush3.msra.mxu1 %v228_v45  ;;  %v199_v46 = vpop.permute.xlu1 %198 }
 0x2a7   :  { %383 = vmatprep.subr.mxu1 %v437_v26  ;;  %v227_v47 = vsel %vm219_vm6, %v174_v32, %v199_v46 }
 0x2a8   :  { %v197_v48 = vpop.permute.xlu0 %196  ;;  %384 = vmatpush3.msra.mxu1 %v227_v47 }
 0x2a9   :  { %385 = vmatprep.subr.mxu1 %v437_v26  ;;  %v226_v49 = vsel %vm219_vm6, %v172_v33, %v197_v48 }
 0x2aa   :  { %386 = vmatpush3.msra.mxu1 %v226_v49  ;;  %v195_v50 = vpop.permute.xlu1 %194 }
 0x2ab   :  { %387 = vmatprep.subr.mxu1 %v437_v26  ;;  %v225_v51 = vsel %vm219_vm6, %v170_v34, %v195_v50 }
 0x2ac   :  { %v193_v52 = vpop.permute.xlu0 %192  ;;  %388 = vmatpush3.msra.mxu1 %v225_v51 }
 0x2ad   :  { %389 = vmatprep.subr.mxu1 %v437_v26  ;;  %v224_v53 = vsel %vm219_vm6, %v168_v35, %v193_v52 }
 0x2ae   :  { %390 = vmatpush3.msra.mxu1 %v224_v53 }
 0x2af   :  { %391 = vmatprep.subr.mxu1 %v437_v26 }
 0x2b0   :  { %392 = vmatpush3.msra.mxu1 %v223_v54 }
 0x2b1   :  { %393 = vmatprep.subr.mxu1 %v437_v26 }
 0x2b2   :  { %394 = vmatpush3.msra.mxu1 %v222_v55 }
 0x2b3   :  { %395 = vmatprep.subr.mxu1 %v437_v26 }
 0x2b4   :  { %396 = vmatpush3.msra.mxu1 %v221_v56 }
 0x2b5   :  { %397 = vmatprep.subr.mxu1 %v437_v26 }
 0x2b6   :  { %398 = vmatpush3.msra.mxu1 %v220_v58 }
 0x2b7   :  { %400 = vmatmul.mubr.msk.f32.vlgmr.msra.gmra.mxu1 %vm234_vm7, %v233_v57 }
 0x377   :  { %v308_v59 = vpop.f32.mrf.mxu1 }
 0x378   :  { %315 = vrot.lane.b32.xlu1 %v308_v59, %s440_s27  ;;  %313 = vst.msk [vmem:[#allocation2] sm:$0xf] %vm312_vm8, %v308_v59 }
 0x379   :  { %v401_v60 = vpop.f32.mrf.mxu1 }
 0x3ea   :  { %v316_v61 = vpop.permute.xlu1 %315 }
 0x3eb   :  { %319 = vst.msk [vmem:[#allocation2 + $0x4] sm:$0xf] %vm312_vm8, %v316_v61 }
 0x3ec   :  { %423 = shalt.err (!%p420_p4)
}
 0x3ed   :  { %s442_s30 = smov 64   ;;  %s443_s4 = smov 4  }
 0x3ee   :  { %331 = dma.vmem_to_hbm [thread:$0]  %s326_s29, 128, %s565_s3, [#allocation3], %s442_s30, %s442_s30, %s443_s4  }
 0x3ef   :  { %432 = dma.done.wait [#allocation3], 128  }
 0x3f0   :  { %433 = vsyncadd [#allocation3], 4294967168 }
 0x3f1   :  { %335 = vsyncpa [#allocation3], 1 }

</bundles_post_ra>
